<compile_context>
chip_gen: v6e
topology: v6e:2x2x1
jax: 0.10.0
libtpu: 0.0.40
codegen_flags: <defaults>
</compile_context>

<pallas_src>
import jax
import jax.numpy as jnp
from jax.experimental import pallas as pl
from jax.experimental.pallas import tpu as pltpu


def _nt_xent_kernel(q_ref, part_ref, key_ref, probs_ref, tgt_ref,
                    l1_ref, l2_ref,
                    m_scr, s_scr):
    k = pl.program_id(1)          # key-column block (reduction axis, arbitrary)
    nk = pl.num_programs(1)

    # --- init online-LSE state --------------------------------------------
    @pl.when(k == 0)
    def _():
        m_scr[...] = jnp.full(m_scr.shape, -jnp.inf, m_scr.dtype)
        s_scr[...] = jnp.zeros(s_scr.shape, s_scr.dtype)

    # --- raw similarity tile on the MXU (bf16 x bf16 -> f32 accumulate) ----
    # Lane dims contracted on both operands (no transpose / XLU copy).
    # No structural mask: the self column is removed analytically in the
    # finalize step and the positive column legitimately belongs to logits1.
    s = jax.lax.dot_general(
        q_ref[...], key_ref[...],
        dimension_numbers=(((1,), (1,)), ((), ())),
        preferred_element_type=jnp.float32)                      # (tr, tk) f32

    # --- flash-style online logsumexp over key blocks ----------------------
    m_prev = m_scr[...]
    m_new = jnp.maximum(m_prev, jnp.max(s, axis=-1, keepdims=True))
    s_scr[...] = (s_scr[...] * jnp.exp(m_prev - m_new)
                  + jnp.sum(jnp.exp(s - m_new), axis=-1, keepdims=True))
    m_scr[...] = m_new

    # --- finalize once per row block ----------------------------------------
    # Safe because the output block index is constant along k and the k axis
    # is "arbitrary" (do not reorder the grid without revisiting this).
    @pl.when(k == nk - 1)
    def _():
        q = q_ref[...].astype(jnp.float32)
        part = part_ref[...].astype(jnp.float32)
        # Same bf16-rounded operands the MXU saw -> consistent with the logits.
        self_sim = jnp.sum(q * q, axis=-1, keepdims=True)        # sim[r, r]
        pos = jnp.sum(q * part, axis=-1, keepdims=True)          # sim[r, r +/- N]

        m_f = m_scr[...]
        # Remove the self column from the accumulated sum.  self_sim is the row
        # max (Cauchy-Schwarz), so exp(self-m) ~= 1 and the positive term keeps
        # the remainder strictly positive for any sane temperature.
        s_corr = s_scr[...] - jnp.exp(self_sim - m_f)
        lse1 = m_f + jnp.log(s_corr)
        l1_ref[...] = lse1 - pos

        # loss2: CE over [pos, probs[r, class != target_r]] with label 0.
        cls = jax.lax.broadcasted_iota(jnp.int32, probs_ref.shape, 1)
        pmask = cls != tgt_ref[...]                              # (tr, n_cls)
        pr = jnp.where(pmask, probs_ref[...], -jnp.inf)
        m2 = jnp.maximum(pos, jnp.max(pr, axis=-1, keepdims=True))
        lse2 = m2 + jnp.log(jnp.exp(pos - m2)
                            + jnp.sum(jnp.exp(pr - m2), axis=-1, keepdims=True))
        l2_ref[...] = lse2 - pos


def _pick_block(total, max_block, multiple):
    """Largest b <= max_block with b % multiple == 0 and total % b == 0, else total."""
    b = min(max_block, total)
    b -= b % multiple
    while b >= multiple:
        if total % b == 0:
            return b
        b -= multiple
    return total


def _round_up(x, m):
    return ((x + m - 1) // m) * m


def _vmem_estimate(tr, tk, d, n_cls):
    """Rough double-buffered VMEM working-set estimate in bytes."""
    d_p = _round_up(d, 128)
    cls_p = _round_up(n_cls, 128)
    tiles = (2 * tr * d_p * 2 * 2      # q + partner tiles (bf16, 2 buffers each)
             + 2 * tk * d_p * 2        # key tiles (bf16, 2 buffers)
             + 2 * tr * cls_p * 4      # probs tiles (f32, 2 buffers)
             + 2 * tr * 128 * 4        # target tiles (i32, lane-padded)
             + 2 * 2 * tr * 128 * 4    # two (tr,1) f32 outputs (lane-padded, 2 bufs)
             + 2 * tr * 128 * 4)       # m/s scratch (lane-padded)
    temps = 3 * tr * tk * 4            # (tr,tk) f32 similarity/exp temporaries
    return tiles + temps


def nt_xent_pallas(z_i, z_j, temperature, probs, target,
                   row_block=512, key_block=1024,
                   max_resident_key_bytes=8 << 20):
    """z_i, z_j: (N, D); probs: (2N, n_cls); target: (N,) int. Returns (loss1, loss2)."""
    n, d = z_i.shape
    two_n = 2 * n
    n_cls = probs.shape[1]
    assert n % 8 == 0, "batch_size must be a multiple of 8 for TPU tiling"
    assert float(temperature) > 0.0

    p = jnp.concatenate([z_i, z_j], axis=0).astype(jnp.float32)      # (2N, D)
    # Row-normalize once, fold 1/temperature into the matmul operand
    # (1/sqrt(T) on each side) so the kernel never does a (2N,2N) divide.
    # TODO(synk): torch CosineSimilarity clamps ||x||*||y|| >= 1e-8; per-row
    # clamping is identical for non-degenerate rows.
    norm = jnp.sqrt(jnp.sum(p * p, axis=-1, keepdims=True))
    p_hat = (p / jnp.maximum(norm, 1e-8)) * jax.lax.rsqrt(jnp.float32(temperature))
    # bf16 MXU operands: halves key-stream HBM bytes, avoids f32-emulated matmul.
    p_bf = p_hat.astype(jnp.bfloat16)

    tgt2 = jnp.concatenate([target, target]).astype(jnp.int32).reshape(two_n, 1)
    probs_f = probs.astype(jnp.float32)

    # Row tile divides N (partner offset must be whole blocks); multiple of 8.
    tr = _pick_block(n, row_block, 8)
    # Key tile: keep the whole (2N, D) key matrix VMEM-resident when its
    # double-buffered bf16 footprint fits (constant block index -> one DMA,
    # nk = 1); otherwise tile the reduction axis.
    if 2 * two_n * d * 2 <= max_resident_key_bytes:
        tk = two_n
    else:
        tk = _pick_block(two_n, key_block, 128)

    # Keep the working set inside a conservative budget (v7x has only 64 MiB
    # physical VMEM / 32 MiB scoped default); shrink the key tile first.
    budget = 24 << 20
    while (_vmem_estimate(tr, tk, d, n_cls) > budget
           and tk % 2 == 0 and (tk // 2) % 8 == 0 and two_n % (tk // 2) == 0):
        tk //= 2

    assert n % tr == 0 and two_n % tk == 0
    n_row_blocks = two_n // tr        # = 2*(N/tr) -> always even (v7x megacore)
    n_key_blocks = two_n // tk
    part_off = n // tr                # partner row block offset (+N rows)

    vmem_limit = min(max(_vmem_estimate(tr, tk, d, n_cls) + (8 << 20), 32 << 20),
                     56 << 20)

    l1_rows, l2_rows = pl.pallas_call(
        _nt_xent_kernel,
        grid_spec=pltpu.PrefetchScalarGridSpec(
            num_scalar_prefetch=0,
            grid=(n_row_blocks, n_key_blocks),
            in_specs=[
                pl.BlockSpec((tr, d), lambda i, k: (i, 0)),                     # query rows (bf16)
                pl.BlockSpec((tr, d),
                             lambda i, k: ((i + part_off) % n_row_blocks, 0)),  # partner rows (bf16)
                pl.BlockSpec((tk, d), lambda i, k: (k, 0)),                     # key rows (bf16)
                pl.BlockSpec((tr, n_cls), lambda i, k: (i, 0)),                 # probs (f32)
                pl.BlockSpec((tr, 1), lambda i, k: (i, 0)),                     # target (i32)
            ],
            out_specs=[
                pl.BlockSpec((tr, 1), lambda i, k: (i, 0)),
                pl.BlockSpec((tr, 1), lambda i, k: (i, 0)),
            ],
            scratch_shapes=[pltpu.VMEM((tr, 1), jnp.float32),   # running max
                            pltpu.VMEM((tr, 1), jnp.float32)],  # running sum
        ),
        out_shape=(jax.ShapeDtypeStruct((two_n, 1), jnp.float32),
                   jax.ShapeDtypeStruct((two_n, 1), jnp.float32)),
        compiler_params=pltpu.CompilerParams(
            dimension_semantics=("parallel", "arbitrary"),
            vmem_limit_bytes=vmem_limit),
    )(p_bf, p_bf, p_bf, probs_f, tgt2)

    inv = 1.0 / two_n
    return jnp.sum(l1_rows) * inv, jnp.sum(l2_rows) * inv


def nt_xent_ref(z_i, z_j, temperature, probs, target):
    """Pure-JAX f32 reference mirroring the PyTorch forward."""
    p = jnp.concatenate([z_i, z_j], axis=0).astype(jnp.float32)
    n = z_i.shape[0]
    two_n = 2 * n
    norms = jnp.sqrt(jnp.sum(p * p, axis=-1, keepdims=True))
    sim = (p @ p.T) / jnp.maximum(norms * norms.T, 1e-8) / temperature
    pos = jnp.concatenate([jnp.diagonal(sim, n), jnp.diagonal(sim, -n)])[:, None]
    mask_m = ~(jnp.eye(two_n, dtype=bool)
               | jnp.eye(two_n, k=n, dtype=bool)
               | jnp.eye(two_n, k=-n, dtype=bool))
    negs = jnp.where(mask_m, sim, -jnp.inf)
    lse1 = jax.nn.logsumexp(jnp.concatenate([pos, negs], axis=1), axis=1, keepdims=True)
    loss1 = jnp.sum(lse1 - pos) / two_n
    t_full = jnp.concatenate([target, target])
    pmask = jnp.arange(probs.shape[1], dtype=jnp.int32)[None, :] != t_full[:, None]
    pr = jnp.where(pmask, probs.astype(jnp.float32), -jnp.inf)
    lse2 = jax.nn.logsumexp(jnp.concatenate([pos, pr], axis=1), axis=1, keepdims=True)
    loss2 = jnp.sum(lse2 - pos) / two_n
    return loss1, loss2


if __name__ == "__main__":
    def run_case(N, D, n_cls, temperature, **kw):
        key = jax.random.PRNGKey(0)
        k1, k2, k3 = jax.random.split(key, 3)
        z_i = jax.random.normal(k1, (N, D), dtype=jnp.float32)
        z_j = jax.random.normal(k2, (N, D), dtype=jnp.float32)
        probs = jax.random.normal(k3, (2 * N, n_cls), dtype=jnp.float32)
        target = jnp.arange(N, dtype=jnp.int32) % n_cls

        l1, l2 = nt_xent_pallas(z_i, z_j, temperature, probs, target, **kw)
        jax.block_until_ready((l1, l2))

        r1, r2 = nt_xent_ref(z_i, z_j, temperature, probs, target)
        # bf16 MXU operands -> tolerance loosened vs the f32 reference
        # (LSE/pos math stays f32; only input rounding differs).
        assert jnp.allclose(l1, r1, rtol=2e-3, atol=2e-3), (l1, r1)
        assert jnp.allclose(l2, r2, rtol=2e-3, atol=2e-3), (l2, r2)

    # Tiny deterministic case (grid 2 x 1, VMEM-resident key).
    run_case(N=8, D=32, n_cls=10, temperature=0.5)
    # Default path on a larger problem: whole key matrix VMEM-resident,
    # single key step (grid 2 x 1).
    run_case(N=512, D=128, n_cls=10, temperature=0.5)
    # Same problem forced onto the tiled path to exercise the multi-block
    # online logsumexp and the partner-block wrap-around (grid 8 x 4).
    run_case(N=512, D=128, n_cls=10, temperature=0.5,
             row_block=128, key_block=256, max_resident_key_bytes=0)

    print("KERNEL_OK")
</pallas_src>

<mosaic_0001>
module attributes {stable_mosaic.version = 11 : i64} {
  func.func @_nt_xent_kernel(%arg0: i32, %arg1: i32, %arg2: memref<8x32xbf16, #tpu.memory_space<vmem>>, %arg3: memref<8x32xbf16, #tpu.memory_space<vmem>>, %arg4: memref<16x32xbf16, #tpu.memory_space<vmem>>, %arg5: memref<8x10xf32, #tpu.memory_space<vmem>>, %arg6: memref<8x1xi32, #tpu.memory_space<vmem>>, %arg7: memref<8x1xf32, #tpu.memory_space<vmem>>, %arg8: memref<8x1xf32, #tpu.memory_space<vmem>>, %arg9: memref<8x1xf32, #tpu.memory_space<vmem>>, %arg10: memref<8x1xf32, #tpu.memory_space<vmem>>) attributes {dimension_semantics = [#tpu.dimension_semantics<parallel>, #tpu.dimension_semantics<arbitrary>], iteration_bounds = array<i64: 2, 1>, scalar_prefetch = 0 : i64, scratch_operands = 2 : i64, tpu.core_type = #tpu.core_type<tc>, window_params = [{transform_indices = @transform_0, window_bounds = array<i64: 8, 32>}, {transform_indices = @transform_1, window_bounds = array<i64: 8, 32>}, {transform_indices = @transform_2, window_bounds = array<i64: 16, 32>}, {transform_indices = @transform_3, window_bounds = array<i64: 8, 10>}, {transform_indices = @transform_4, window_bounds = array<i64: 8, 1>}, {transform_indices = @transform_5, window_bounds = array<i64: 8, 1>}, {transform_indices = @transform_6, window_bounds = array<i64: 8, 1>}]} {
    %c0_i32 = arith.constant 0 : i32
    %0 = arith.cmpi eq, %arg1, %c0_i32 : i32
    %1 = arith.extui %0 : i1 to i32
    %c0_i32_0 = arith.constant 0 : i32
    %2 = arith.cmpi ne, %1, %c0_i32_0 : i32
    scf.if %2 {
      %cst_16 = arith.constant 0xFF800000 : f32
      %25 = vector.broadcast %cst_16 : f32 to vector<8x1xf32>
      %c0_17 = arith.constant 0 : index
      %c0_18 = arith.constant 0 : index
      %26 = vector.load %arg9[%c0_17, %c0_18] : memref<8x1xf32, #tpu.memory_space<vmem>>, vector<8x1xf32>
      tpu.vector_store %arg9[%c0_17, %c0_18], %25 {strides = array<i32>} : memref<8x1xf32, #tpu.memory_space<vmem>>, vector<8x1xf32>,
      %cst_19 = arith.constant 0.000000e+00 : f32
      %27 = vector.broadcast %cst_19 : f32 to vector<8x1xf32>
      %c0_20 = arith.constant 0 : index
      %c0_21 = arith.constant 0 : index
      %28 = vector.load %arg10[%c0_20, %c0_21] : memref<8x1xf32, #tpu.memory_space<vmem>>, vector<8x1xf32>
      tpu.vector_store %arg10[%c0_20, %c0_21], %27 {strides = array<i32>} : memref<8x1xf32, #tpu.memory_space<vmem>>, vector<8x1xf32>,
    } else {
    }
    %c0 = arith.constant 0 : index
    %c0_1 = arith.constant 0 : index
    %3 = vector.load %arg2[%c0, %c0_1] : memref<8x32xbf16, #tpu.memory_space<vmem>>, vector<8x32xbf16>
    %c0_2 = arith.constant 0 : index
    %c0_3 = arith.constant 0 : index
    %4 = vector.load %arg4[%c0_2, %c0_3] : memref<16x32xbf16, #tpu.memory_space<vmem>>, vector<16x32xbf16>
    %cst = arith.constant dense<0.000000e+00> : vector<8x16xf32>
    %5 = tpu.matmul %3, %4, %cst {dimension_numbers = #tpu.dot_dimension_numbers<[1], [1], [0], [0], [0, 0, 1, 0], [], []>} : vector<8x32xbf16>, vector<16x32xbf16>, vector<8x16xf32> -> vector<8x16xf32>
    %c0_4 = arith.constant 0 : index
    %c0_5 = arith.constant 0 : index
    %6 = vector.load %arg9[%c0_4, %c0_5] : memref<8x1xf32, #tpu.memory_space<vmem>>, vector<8x1xf32>
    %cst_6 = arith.constant dense<0xFF800000> : vector<8xf32>
    %7 = vector.multi_reduction <maximumf>, %5, %cst_6 [1] : vector<8x16xf32> to vector<8xf32>
    %8 = vector.shape_cast %7 : vector<8xf32> to vector<8x1xf32>
    %9 = arith.maximumf %6, %8 : vector<8x1xf32>
    %c0_7 = arith.constant 0 : index
    %c0_8 = arith.constant 0 : index
    %10 = vector.load %arg10[%c0_7, %c0_8] : memref<8x1xf32, #tpu.memory_space<vmem>>, vector<8x1xf32>
    %11 = arith.subf %6, %9 : vector<8x1xf32>
    %12 = math.exp %11 : vector<8x1xf32>
    %13 = arith.mulf %10, %12 : vector<8x1xf32>
    %14 = vector.broadcast %9 : vector<8x1xf32> to vector<8x16xf32>
    %15 = arith.subf %5, %14 : vector<8x16xf32>
    %16 = math.exp %15 : vector<8x16xf32>
    %cst_9 = arith.constant dense<0.000000e+00> : vector<8xf32>
    %17 = vector.multi_reduction <add>, %16, %cst_9 [1] : vector<8x16xf32> to vector<8xf32>
    %18 = vector.shape_cast %17 : vector<8xf32> to vector<8x1xf32>
    %19 = arith.addf %13, %18 : vector<8x1xf32>
    %c0_10 = arith.constant 0 : index
    %c0_11 = arith.constant 0 : index
    %20 = vector.load %arg10[%c0_10, %c0_11] : memref<8x1xf32, #tpu.memory_space<vmem>>, vector<8x1xf32>
    tpu.vector_store %arg10[%c0_10, %c0_11], %19 {strides = array<i32>} : memref<8x1xf32, #tpu.memory_space<vmem>>, vector<8x1xf32>,
    %c0_12 = arith.constant 0 : index
    %c0_13 = arith.constant 0 : index
    %21 = vector.load %arg9[%c0_12, %c0_13] : memref<8x1xf32, #tpu.memory_space<vmem>>, vector<8x1xf32>
    tpu.vector_store %arg9[%c0_12, %c0_13], %9 {strides = array<i32>} : memref<8x1xf32, #tpu.memory_space<vmem>>, vector<8x1xf32>,
    %c0_i32_14 = arith.constant 0 : i32
    %22 = arith.cmpi eq, %arg1, %c0_i32_14 : i32
    %23 = arith.extui %22 : i1 to i32
    %c0_i32_15 = arith.constant 0 : i32
    %24 = arith.cmpi ne, %23, %c0_i32_15 : i32
    scf.if %24 {
      %c0_16 = arith.constant 0 : index
      %c0_17 = arith.constant 0 : index
      %25 = vector.load %arg2[%c0_16, %c0_17] : memref<8x32xbf16, #tpu.memory_space<vmem>>, vector<8x32xbf16>
      %26 = arith.extf %25 : vector<8x32xbf16> to vector<8x32xf32>
      %c0_18 = arith.constant 0 : index
      %c0_19 = arith.constant 0 : index
      %27 = vector.load %arg3[%c0_18, %c0_19] : memref<8x32xbf16, #tpu.memory_space<vmem>>, vector<8x32xbf16>
      %28 = arith.extf %27 : vector<8x32xbf16> to vector<8x32xf32>
      %29 = arith.mulf %26, %26 : vector<8x32xf32>
      %cst_20 = arith.constant dense<0.000000e+00> : vector<8xf32>
      %30 = vector.multi_reduction <add>, %29, %cst_20 [1] : vector<8x32xf32> to vector<8xf32>
      %31 = vector.shape_cast %30 : vector<8xf32> to vector<8x1xf32>
      %32 = arith.mulf %26, %28 : vector<8x32xf32>
      %cst_21 = arith.constant dense<0.000000e+00> : vector<8xf32>
      %33 = vector.multi_reduction <add>, %32, %cst_21 [1] : vector<8x32xf32> to vector<8xf32>
      %34 = vector.shape_cast %33 : vector<8xf32> to vector<8x1xf32>
      %c0_22 = arith.constant 0 : index
      %c0_23 = arith.constant 0 : index
      %35 = vector.load %arg9[%c0_22, %c0_23] : memref<8x1xf32, #tpu.memory_space<vmem>>, vector<8x1xf32>
      %c0_24 = arith.constant 0 : index
      %c0_25 = arith.constant 0 : index
      %36 = vector.load %arg10[%c0_24, %c0_25] : memref<8x1xf32, #tpu.memory_space<vmem>>, vector<8x1xf32>
      %37 = arith.subf %31, %35 : vector<8x1xf32>
      %38 = math.exp %37 : vector<8x1xf32>
      %39 = arith.subf %36, %38 : vector<8x1xf32>
      %40 = math.log %39 : vector<8x1xf32>
      %41 = arith.addf %35, %40 : vector<8x1xf32>
      %42 = arith.subf %41, %34 : vector<8x1xf32>
      %c0_26 = arith.constant 0 : index
      %c0_27 = arith.constant 0 : index
      %43 = vector.load %arg7[%c0_26, %c0_27] : memref<8x1xf32, #tpu.memory_space<vmem>>, vector<8x1xf32>
      tpu.vector_store %arg7[%c0_26, %c0_27], %42 {strides = array<i32>} : memref<8x1xf32, #tpu.memory_space<vmem>>, vector<8x1xf32>,
      %44 = tpu.iota {dimensions = array<i32: 1>} : vector<8x10xi32>
      %c0_28 = arith.constant 0 : index
      %c0_29 = arith.constant 0 : index
      %45 = vector.load %arg6[%c0_28, %c0_29] : memref<8x1xi32, #tpu.memory_space<vmem>>, vector<8x1xi32>
      %46 = vector.broadcast %45 : vector<8x1xi32> to vector<8x10xi32>
      %47 = arith.cmpi ne, %44, %46 : vector<8x10xi32>
      %c0_30 = arith.constant 0 : index
      %c0_31 = arith.constant 0 : index
      %48 = vector.load %arg5[%c0_30, %c0_31] : memref<8x10xf32, #tpu.memory_space<vmem>>, vector<8x10xf32>
      %cst_32 = arith.constant 0xFF800000 : f32
      %49 = vector.broadcast %cst_32 : f32 to vector<8x10xf32>
      %50 = arith.select %47, %48, %49 : vector<8x10xi1>, vector<8x10xf32>
      %cst_33 = arith.constant dense<0xFF800000> : vector<8xf32>
      %51 = vector.multi_reduction <maximumf>, %50, %cst_33 [1] : vector<8x10xf32> to vector<8xf32>
      %52 = vector.shape_cast %51 : vector<8xf32> to vector<8x1xf32>
      %53 = arith.maximumf %34, %52 : vector<8x1xf32>
      %54 = arith.subf %34, %53 : vector<8x1xf32>
      %55 = math.exp %54 : vector<8x1xf32>
      %56 = vector.broadcast %53 : vector<8x1xf32> to vector<8x10xf32>
      %57 = arith.subf %50, %56 : vector<8x10xf32>
      %58 = math.exp %57 : vector<8x10xf32>
      %cst_34 = arith.constant dense<0.000000e+00> : vector<8xf32>
      %59 = vector.multi_reduction <add>, %58, %cst_34 [1] : vector<8x10xf32> to vector<8xf32>
      %60 = vector.shape_cast %59 : vector<8xf32> to vector<8x1xf32>
      %61 = arith.addf %55, %60 : vector<8x1xf32>
      %62 = math.log %61 : vector<8x1xf32>
      %63 = arith.addf %53, %62 : vector<8x1xf32>
      %64 = arith.subf %63, %34 : vector<8x1xf32>
      %c0_35 = arith.constant 0 : index
      %c0_36 = arith.constant 0 : index
      %65 = vector.load %arg8[%c0_35, %c0_36] : memref<8x1xf32, #tpu.memory_space<vmem>>, vector<8x1xf32>
      tpu.vector_store %arg8[%c0_35, %c0_36], %64 {strides = array<i32>} : memref<8x1xf32, #tpu.memory_space<vmem>>, vector<8x1xf32>,
    } else {
    }
    return
  }
  func.func @transform_0(%arg0: i32, %arg1: i32) -> (i32, i32) {
    %c0_i32 = arith.constant 0 : i32
    %c0_i32_0 = arith.constant 0 : i32
    return %arg0, %c0_i32 : i32, i32
  }
  func.func @transform_1(%arg0: i32, %arg1: i32) -> (i32, i32) {
    %c1_i32 = arith.constant 1 : i32
    %0 = arith.addi %arg0, %c1_i32 : i32
    %c2_i32 = arith.constant 2 : i32
    %c0_i32 = arith.constant 0 : i32
    %1 = arith.cmpi eq, %c2_i32, %c0_i32 : i32
    %c1_i32_0 = arith.constant 1 : i32
    %2 = arith.select %1, %c1_i32_0, %c2_i32 : i32
    %3 = arith.remsi %0, %2 : i32
    %c0_i32_1 = arith.constant 0 : i32
    %4 = arith.cmpi ne, %3, %c0_i32_1 : i32
    %c0_i32_2 = arith.constant 0 : i32
    %5 = arith.cmpi slt, %3, %c0_i32_2 : i32
    %c0_i32_3 = arith.constant 0 : i32
    %6 = arith.cmpi slt, %2, %c0_i32_3 : i32
    %7 = arith.xori %5, %6 : i1
    %8 = arith.andi %7, %4 : i1
    %9 = arith.addi %3, %2 : i32
    %10 = arith.select %8, %9, %3 : i32
    %c0_i32_4 = arith.constant 0 : i32
    %c0_i32_5 = arith.constant 0 : i32
    return %10, %c0_i32_4 : i32, i32
  }
  func.func @transform_2(%arg0: i32, %arg1: i32) -> (i32, i32) {
    %c0_i32 = arith.constant 0 : i32
    %c0_i32_0 = arith.constant 0 : i32
    return %arg1, %c0_i32 : i32, i32
  }
  func.func @transform_3(%arg0: i32, %arg1: i32) -> (i32, i32) {
    %c0_i32 = arith.constant 0 : i32
    %c0_i32_0 = arith.constant 0 : i32
    return %arg0, %c0_i32 : i32, i32
  }
  func.func @transform_4(%arg0: i32, %arg1: i32) -> (i32, i32) {
    %c0_i32 = arith.constant 0 : i32
    %c0_i32_0 = arith.constant 0 : i32
    return %arg0, %c0_i32 : i32, i32
  }
  func.func @transform_5(%arg0: i32, %arg1: i32) -> (i32, i32) {
    %c0_i32 = arith.constant 0 : i32
    %c0_i32_0 = arith.constant 0 : i32
    return %arg0, %c0_i32 : i32, i32
  }
  func.func @transform_6(%arg0: i32, %arg1: i32) -> (i32, i32) {
    %c0_i32 = arith.constant 0 : i32
    %c0_i32_0 = arith.constant 0 : i32
    return %arg0, %c0_i32 : i32, i32
  }
}

</mosaic_0001>

<bundles_post_ra>
// kernel: tpu_custom_call.1
= control target key start
LH: loop header
LB: loop body
LE: loop exit
PB: predicated region body
PF: predicated region fallthrough
CT: control target
= control target key end

     0   :  { %s1351_s0 = inlined_call_operand.hbm [shape: bf16[16,32], index: 0, kind: input, shape index: {}]   ;;  %s1352_s1 = inlined_call_operand.hbm [shape: bf16[16,32], index: 1, kind: input, shape index: {}]   ;;  %s1353_s2 = inlined_call_operand.hbm [shape: bf16[16,32], index: 2, kind: input, shape index: {}]   ;;  %s1354_s3 = inlined_call_operand.vmem [shape: f32[16,10], index: 3, kind: input, shape index: {}]   ;;  %s1355_s4 = inlined_call_operand.vmem [shape: s32[16,1], index: 4, kind: input, shape index: {}]   ;;  %s1356_s5 = inlined_call_operand.vmem [shape: f32[16,1], index: 5, kind: output, shape index: {0}]   ;;  %s1357_s6 = inlined_call_operand.vmem [shape: f32[16,1], index: 6, kind: output, shape index: {1}]  }
   0x1   :  { %1366 = sst [smem:[#allocation13_spill]] %s1353_s2 }
   0x2   :  { %1367 = sst [smem:[#allocation14_spill]] %s1354_s3 }
   0x3   :  { %1368 = sst [smem:[#allocation15_spill]] %s1355_s4 }
   0x4   :  { %1369 = sst [smem:[#allocation16_spill]] %s1356_s5 }
   0x5   :  { %1370 = sst [smem:[#allocation17_spill]] %s1357_s6 }
   0x6   :  { %12 = vsyncpa [#allocation5], 0 }
   0x7   :  { %14 = vsyncpa [#allocation5 + $0x1], 0 }
   0x8   :  { %15 = vsyncpa [#allocation7], 0 }
   0x9   :  { %17 = vsyncpa [#allocation7 + $0x1], 0  ;;  %s1108_s21 = smov 0   ;;  %s1110_s22 = smov 0  }
   0xa   :  { %s1112_s23 = smov 0   ;;  %s1114_s24 = smov 0  }
   0xb   :  { %s1116_s25 = smov 0   ;;  %s1118_s26 = smov 0  }
   0xc   :  { %s1120_s27 = smov 0   ;;  %s1122_s28 = smov 0  }
   0xd   :  { %s1124_s29 = smov 0  }
   0xe LB: > { %1371 = sst [smem:[#allocation12_spill]] %s1054_s27  ;;  %s1358_s30 = sadd.s32 4294967295, %s1062_s29   ;;  %s1062_s29 = sphi %s1124_s29, %s23_s29   ;;  %s1058_s28 = sphi %s1122_s28, %s1398_s28   ;;  %s1054_s27 = sphi %s1120_s27, %s1397_s27   ;;  %s1050_s26 = sphi %s1118_s26, %s1396_s26   ;;  %s1046_s25 = sphi %s1116_s25, %s1395_s25   ;;  %s1042_s24 = sphi %s1114_s24, %s1394_s24   ;;  %s1038_s23 = sphi %s1112_s23, %s1393_s23   ;;  %s1034_s22 = sphi %s1110_s22, %s1392_s22   ;;  %s1030_s21 = sphi %s1108_s21, %s1391_s21  }
   0xf   : > { %p750_p0 = scmp.ge.s32.totalorder %s1062_s29, 1  ;;  %p1157_p1 = scmp.eq.s32.totalorder %s1358_s30, 0 }
  0x10   : > { %p248_p2 = scmp.lt.s32.totalorder %s1062_s29, 3  ;;  %s1064_s9 = smov [#allocation8]  }
  0x11   : > { %s1372_s7 = scalar_select %p1157_p1, 1, 0 }
  0x12   : > { %p1162_p3 = pnand %p750_p0, %p248_p2  ;;  %s263_s10 = sshll.u32 %s1064_s9, 4  ;;  %s264_s10 = int_to_ptr.vmem [resolvable:$true] %s263_s10 }
  0x13   : > { %s909_s11 = scalar_lea.vmem %s264_s10, 128  ;;  %p917_p10 = scmp.lt.s32.totalorder %s264_s10, %s264_s10 }
  0x14   : > { %s1373_s8 = scalar_select %p1162_p3, 1, 0 }
  0x15   : > { %p788_p4 = pneg %p1162_p3  ;;  %p910_p7 = scmp.ne.s32.totalorder %s264_s10, %s909_s11 }
  0x16   : > { %p918_p11 = scmp.lt.s32.totalorder %s909_s11, %s909_s11 }
  0x17   : > { %p789_p5 = pnand %p788_p4, %p1157_p1 }
  0x18   : > { %p919_p12 = por %p918_p11, %p917_p10 }
  0x19   : > { %p900_p6 = pneg %p789_p5 }
  0x1b   : > { %p912_p8 = pnand %p910_p7, %p900_p6 }
  0x1d   : > { %p913_p9 = pneg %p912_p8 }
  0x1f   : > { %p920_p13 = pnand %p919_p12, %p913_p9 }
  0x21   : > { %923 = shalt.err (!%p920_p13)
}
  0x22   : > { %s1065_s12 = smov 64   ;;  %s1066_s13 = smov 4  }
  0x23   : > { %s1374_s2 = sld [smem:[#allocation13_spill]]  ;;  %s35_s16 = sadd.s32 1, %s1058_s28 }
  0x24   : > { %p37_p0 = scmp.ge.s32.totalorder %s35_s16, 2  ;;  %s42_s17 = sadd.s32 1, %s1050_s26 }
  0x25   : > { %p49_p2 = scmp.ne.s32.totalorder %s1050_s26, %s1046_s25  ;;  %p1360_p4 = scmp.eq.s32.totalorder %s1062_s29, 0 }
  0x26   : > { %s1178_s18 = scalar_select %p37_p0, 0, %s35_s16  }
  0x27   : > { %p1182_p6 = por %p1360_p4, %p49_p2  ;;  %p55_p7 = scmp.ne.s32.totalorder %s1046_s25, %s1042_s24 }
  0x28   : > { %s39_s20 = ssub.s32 %s1058_s28, %s1178_s18  ;;  %s78_s11 = sadd.s32 1, %s1178_s18 }
  0x29   : > { %791 = dma.hbm_to_vmem [thread:$0]  (!%p789_p5), %s1374_s2, 128, %s264_s10, [#allocation7], %s1065_s12, %s1065_s12, %s1066_s13  }
  0x2a   : > { %p40_p5 = scmp.eq.s32.totalorder %s39_s20, 0  ;;  %p1192_p8 = por %p1157_p1, %p55_p7 }
  0x2b   : > { %s67_s10 = ssub.s32 0, %s35_s16  ;;  %s80_s14 = ssub.s32 0, %s78_s11 }
  0x2c   : > { %s1376_s9 = scalar_select %p1192_p8, 1, 0 }
  0x2d   : > { %s1198_s12 = scalar_select %p40_p5, %s1050_s26, %s42_s17  }
  0x2e   : > { %s1200_s13 = smin.u32 %s67_s10, %s35_s16  ;;  %p800_p9 = scmp.lt.s32.totalorder %s1062_s29, 2 }
  0x2f   : > { %s747_s15 = smin.u32 %s80_s14, %s78_s11  ;;  %s277_s30 = sand.u32 1, %s1050_s26  }
  0x30   : > { %s1204_s24 = sand.u32 1, %s747_s15   ;;  %s753_s20 = sshll.u32 %s277_s30, 2 }
  0x31   : > { %s754_s2 = sshll.u32 %s1058_s28, 6  ;;  %s281_s4 = scalar_lea.vmem [#allocation4], %s753_s20 }
  0x32   : > { %s286_s3 = scalar_lea.hbm %s1351_s0, %s754_s2  ;;  %s288_s27 = sshll.u32 %s281_s4, 4  ;;  %s289_s27 = int_to_ptr.vmem [resolvable:$true] %s288_s27 }
  0x33   : > { %p1214_p10 = pnand %p800_p9, %p1182_p6  ;;  %s278_s17 = scalar_lea.sflag [#allocation5], %s277_s30 }
  0x34   : > { %s937_s10 = scalar_lea.vmem %s289_s27, 64  ;;  %s1067_s11 = smov [#allocation4]  }
  0x35   : > { %p926_p11 = pneg %p1214_p10  ;;  %p938_p12 = scmp.ne.s32.totalorder %s289_s27, %s937_s10 }
  0x36   : > { %s942_s5 = sshll.u32 %s1067_s11, 4  ;;  %s943_s5 = int_to_ptr.vmem [resolvable:$false] %s942_s5 }
  0x37   : > { %p940_p13 = pnand %p938_p12, %p926_p11  ;;  %s944_s2 = scalar_lea.vmem %s943_s5, 128 }
  0x38   : > { %p945_p2 = scmp.lt.s32.totalorder %s289_s27, %s943_s5  ;;  %p946_p7 = scmp.lt.s32.totalorder %s944_s2, %s937_s10 }
  0x39   : > { %p941_p0 = pneg %p940_p13 }
  0x3a   : > { %p947_p5 = por %p946_p7, %p945_p2 }
  0x3c   : > { %p948_p4 = pnand %p947_p5, %p941_p0 }
  0x3e   : > { %951 = shalt.err (!%p948_p4)
}
  0x3f   : > { %795 = dma.hbm_to_vmem [thread:$0]  (!%p1214_p10), %s286_s3, 64, %s289_s27, %s278_s17  }
  0x40   : > { %s69_s4 = sand.u32 1, %s1200_s13   ;;  %s94_s6 = sadd.s32 1, %s1038_s23 }
  0x41   : > { %p746_p4 = scmp.lt.s32.totalorder %s69_s4, 0  ;;  %s76_s30 = sadd.s32 2, %s69_s4 }
  0x42   : > { %p749_p6 = scmp.lt.s32.totalorder %s1204_s24, 0  ;;  %s89_s19 = sadd.s32 2, %s1204_s24 }
  0x43   : > { %s1400_s30 = smov (!%p746_p4, %s76_s30), %s69_s4  ;;  %p101_p11 = scmp.ne.s32.totalorder %s1038_s23, %s1034_s22 }
  0x44   : > { %s1402_s19 = smov (!%p749_p6, %s89_s19), %s1204_s24  ;;  %p107_p12 = scmp.ne.s32.totalorder %s1034_s22, %s1030_s21 }
  0x45   : > { %s91_s14 = ssub.s32 %s1400_s30, %s1402_s19  ;;  %s295_s15 = sand.u32 1, %s1062_s29  }
  0x46   : > { %p92_p13 = scmp.eq.s32.totalorder %s91_s14, 0  ;;  %p1378_p0 = scmp.eq.s32.totalorder %s1062_s29, 0 }
  0x47   : > { %p1236_p10 = por %p107_p12, %p1157_p1  ;;  %s297_s13 = sand.u32 1, %s1038_s23  }
  0x48   : > { %p103_p2 = por %p101_p11, %p1378_p0  ;;  %s759_s20 = sshll.u32 %s1400_s30, 6 }
  0x49   : > { %s1379_s3 = scalar_select %p1236_p10, 1, 0 }
  0x4a   : > { %s1241_s27 = scalar_select %p92_p13, %s1038_s23, %s94_s6  }
  0x4b   : > { %s755_s16 = sshll.u32 %s297_s13, 2  ;;  %s1247_s24 = scalar_lea.hbm %s1352_s1, %s759_s20 }
  0x4c   : > { %p1251_p7 = pnand %p800_p9, %p103_p2  ;;  %s299_s11 = scalar_lea.vmem [#allocation6], %s755_s16 }
  0x4d   : > { %s319_s5 = sshll.u32 %s299_s11, 4  ;;  %s296_s2 = scalar_lea.sflag [#allocation7], %s295_s15  ;;  %s320_s5 = int_to_ptr.vmem [resolvable:$true] %s319_s5 }
  0x4e   : > { %s952_s4 = scalar_lea.hbm %s1247_s24, 64  ;;  %p954_p4 = pneg %p1251_p7 }
  0x4f   : > { %p953_p5 = scmp.ne.s32.totalorder %s1247_s24, %s952_s4  ;;  %s957_s19 = scalar_lea.hbm %s1352_s1, 128 }
  0x50   : > { %p958_p9 = scmp.lt.s32.totalorder %s1247_s24, %s1352_s1  ;;  %p959_p12 = scmp.lt.s32.totalorder %s957_s19, %s952_s4 }
  0x51   : > { %p955_p6 = pnand %p954_p4, %p953_p5 }
  0x52   : > { %p960_p13 = por %p959_p12, %p958_p9 }
  0x53   : > { %p956_p11 = pneg %p955_p6 }
  0x55   : > { %p961_p0 = pnand %p960_p13, %p956_p11 }
  0x57   : > { %964 = shalt.err (!%p961_p0)
}
  0x58   : > { %s965_s20 = scalar_lea.vmem %s320_s5, 64  ;;  %s1068_s15 = smov [#allocation6]  }
  0x59   : > { %p966_p2 = scmp.ne.s32.totalorder %s320_s5, %s965_s20  ;;  %s970_s16 = sshll.u32 %s1068_s15, 4  ;;  %s971_s16 = int_to_ptr.vmem [resolvable:$false] %s970_s16 }
  0x5a   : > { %s972_s17 = scalar_lea.vmem %s971_s16, 128  ;;  %p973_p5 = scmp.lt.s32.totalorder %s320_s5, %s971_s16 }
  0x5b   : > { %p968_p1 = pnand %p966_p2, %p954_p4  ;;  %p974_p6 = scmp.lt.s32.totalorder %s972_s17, %s965_s20 }
  0x5d   : > { %p969_p10 = pneg %p968_p1  ;;  %p975_p8 = por %p974_p6, %p973_p5 }
  0x5f   : > { %p976_p3 = pnand %p975_p8, %p969_p10 }
  0x61   : > { %979 = shalt.err (!%p976_p3)
}
  0x62   : > { %798 = dma.hbm_to_vmem [thread:$0]  (!%p1251_p7), %s1247_s24, 64, %s320_s5, %s296_s2  }
  0x63   : > { %p1381_p11 = scmp.ne.s32.totalorder %s1373_s8, 0 }
  0x64   : > { %s344_s10 = sand.u32 (!%p1381_p11), 1, %s1046_s25   ;;  %p1382_p1 = scmp.ne.s32.totalorder (!%p1381_p11), %s1376_s9, 0 }
  0x65   : > { %342 = sbr.rel (%p1381_p11) target bundleno = 816 (0x330), region = 40  ;;  %s1272_s11 = sshll.u32 (!%p1381_p11), %s344_s10, 2 }
  0x66   : > { %s345_s4 = scalar_lea.sflag (!%p1381_p11), [#allocation5], %s344_s10  ;;  %s348_s6 = scalar_lea.vmem (!%p1381_p11), [#allocation4], %s1272_s11 }
  0x6a   : > { %1017 = dma.done.wait (%p1382_p1), %s345_s4, 64  }
  0x6b   : > { %1019 = vsyncadd (%p1382_p1), %s345_s4, 4294967232  ;;  %s1383_s21 = sadd.s32 4294967295, %s1062_s29   ;;  %s355_s8 = sand.u32 1, %s1034_s22  }
  0x6c   : > { %s353_s24 = sand.u32 1, %s1383_s21   ;;  %s762_s5 = sshll.u32 %s355_s8, 2 }
  0x6d   : > { %s354_s2 = scalar_lea.sflag [#allocation7], %s353_s24  ;;  %s357_s30 = scalar_lea.vmem [#allocation6], %s762_s5 }
  0x6e   : > { %p1384_p3 = scmp.ne.s32.totalorder %s1379_s3, 0 }
  0x70   : > { %1021 = dma.done.wait (%p1384_p3), %s354_s2, 64  }
  0x71   : > { %1023 = vsyncadd (%p1384_p3), %s354_s2, 4294967232  ;;  %p1385_p8 = scmp.ne.s32.totalorder %s1372_s7, 0 }
  0x73   : > { %1025 = dma.done.wait (%p1385_p8), [#allocation7], 128  }
  0x74   : > { %1027 = vsyncadd (%p1385_p8), [#allocation7], 4294967168  ;;  %vm441_vm0 = vcmask 7168   ;;  %v1069_v0 = vmov 0.0   ;;  %vm1070_vm1 = vmmov 0   ;;  %vm452_vm2 = vcmask 261120  }
  0x75   : > { %443 = vst.msk [vmem:[#allocation3] sm:$0xff] %vm441_vm0, %v1069_v0  ;;  %774 = vmatprep.subr.bf16.mxu0 %v1069_v0  ;;  %776 = vmatprep.mubr.msk.bf16.mxu0 %vm1070_vm1, %v1069_v0  ;;  %v883_v1 = vld [vmem:[#allocation8] sm:$0xff]   ;;  %v444_v3 = vld [vmem:[%s348_s6] sm:$0xf]  ;;  %v1071_v4 = vmov 0   ;;  %s1386_s7 = sld [smem:[#allocation12_spill]]  ;;  %v551_v22 = vlaneseq }
  0x76   : > { %v457_v2 = vsel %vm452_vm2, %v883_v1, 0  ;;  %881 = vset.pattern.permute.xlu0 %v1071_v4  ;;  %882 = vset.pattern.permute.xlu1 %v1071_v4  ;;  %v528_v5 = vld [vmem:[%s348_s6] sm:$0xf]  ;;  %v530_v6 = vld [vmem:[%s357_s30] sm:$0xf]  ;;  %v1072_v9 = vmov -inf  }
  0x77   : > { %775 = vmatpush3.bf16.xpose.msra.mxu0 %v457_v2  ;;  %v529_v7 = vunpack.c.l.bf16 %v528_v5  ;;  %v531_v8 = vunpack.c.l.bf16 %v530_v6  ;;  %442 = vst.msk [vmem:[#allocation2] sm:$0xff] %vm441_vm0, %v1072_v9  ;;  %vm500_vm3 = vcmask 130048   ;;  %s1387_s14 = sld [smem:[#allocation15_spill]]  ;;  %v552_v23 = vand.u32 127, %v551_v22 }
  0x78   : > { %s1388_s16 = sld [smem:[#allocation14_spill]]  ;;  %vm560_vm5 = vcmask 80896  }
  0x79   : > { %v536_v10 = vmul.f32 %v531_v8, %v529_v7  ;;  %v532_v28 = vmul.f32 %v529_v7, %v529_v7  ;;  %s1389_s4 = sld [smem:[#allocation16_spill]] }
  0x7a   : > { %s1390_s8 = sld [smem:[#allocation17_spill]] }
  0x7b   : > { %v537_v11 = vsel %vm452_vm2, %v536_v10, 0.0  ;;  %p420_p10 = scmp.lt.s32.totalorder %s1386_s7, 1  ;;  %v533_v29 = vsel %vm452_vm2, %v532_v28, 0.0 }
  0x7c   : > { %538 = vadd.xlane.f32.xlu1 %v537_v11  ;;  %v505_v48 = vld [vmem:[#allocation3] sm:$0xff] }
  0x7d   : > { %s1404_s7 = smov (!%p420_p10, %s1386_s7), 1 }
  0x7e   : > { %777 = vmatmul.mubr.msk.bf16.vlgmr.msra.gmra.mxu0 %vm452_vm2, %v444_v3  ;;  %s1298_s9 = sshll.u32 %s1404_s7, 3  ;;  %v499_v18 = vld [vmem:[#allocation2] sm:$0xff] }
  0x7f   : > { %s427_s13 = scalar_lea.vmem %s1387_s14, %s1298_s9  ;;  %s423_s17 = scalar_lea.vmem %s1388_s16, %s1298_s9 }
  0x80   : > { %v553_v17 = vld [vmem:[%s427_s13] sm:$0xff]  ;;  %s431_s6 = scalar_lea.vmem %s1389_s4, %s1298_s9  ;;  %s435_s5 = scalar_lea.vmem %s1390_s8, %s1298_s9 }
  0x81   : > { %v558_v25 = vld [vmem:[%s423_s17] sm:$0xff] }
 0x105   : > { %v539_v30 = vpop.xlane.xlu1 %538 }
 0x13e   : > { %v493_v12 = vpop.f32.mrf.mxu0 }
 0x13f   : > { %v501_v13 = vsel %vm500_vm3, %v493_v12, -inf }
 0x140   : > { %502 = vmax.xlane.f32.xlu0 %v501_v13  ;;  %v778_v14 = vpop.f32.mrf.mxu0 }
 0x142   : > { %v496_v15 = vpop.f32.mrf.mxu0 }
 0x144   : > { %v779_v16 = vpop.f32.mrf.mxu0 }
 0x156   : > { %555 = vperm.xlu0 %881, %v553_v17  }
 0x1c9   : > { %v503_v19 = vpop.xlane.xlu0 %502 }
 0x1ca   : > { %v504_v20 = vmax.f32 %v499_v18, %v503_v19 }
 0x1cc   : > { %v506_v21 = vsub.f32 %v499_v18, %v504_v20  ;;  %524 = vst.msk [vmem:[#allocation2] sm:$0xff] %vm441_vm0, %v504_v20  ;;  %512 = vperm.xlu1 %882, %v504_v20  }
 0x1ce   : > { %v507_v42 = vmul.f32 1.442695, %v506_v21 }
 0x1d1   : > { %v556_v24 = vpop.permute.xlu0 %555 }
 0x1d2   : > { %vm557_vm4 = vcmp.ne.s32.totalorder %v552_v23, %v556_v24 }
 0x1d3   : > { %v559_v26 = vsel %vm557_vm4, %v558_v25, -inf  ;;  %v540_v44 = vld [vmem:[#allocation2] sm:$0xff] }
 0x1d4   : > { %v561_v27 = vsel %vm560_vm5, %v559_v26, -inf }
 0x1f0   : > { %562 = vmax.xlane.f32.xlu1 %v561_v27 }
 0x1f4   : > { %534 = vadd.xlane.f32.xlu1 %v533_v29 }
 0x247   : > { %v513_v31 = vpop.permute.xlu1 %512 }
 0x248   : > { %v515_v32 = vsub.f32 %v493_v12, %v513_v31 }
 0x24a   : > { %v516_v33 = vmul.f32 1.442695, %v515_v32 }
 0x24c   : > { %884 = vpow2.f32 %v516_v33 }
 0x259   : > { %v885_v34 = vpop.eup %884 }
 0x25a   : > { %v518_v35 = vsel %vm500_vm3, %v885_v34, 0.0 }
 0x25b   : > { %519 = vadd.xlane.f32.xlu0 %v518_v35 }
 0x279   : > { %v563_v36 = vpop.xlane.xlu1 %562 }
 0x27a   : > { %v564_v37 = vmax.f32 %v539_v30, %v563_v36 }
 0x27c   : > { %v568_v38 = vsub.f32 %v559_v26, %v564_v37  ;;  %v565_v59 = vsub.f32 %v539_v30, %v564_v37 }
 0x27d   : > { %v535_v43 = vpop.xlane.xlu1 %534 }
 0x27e   : > { %v569_v39 = vmul.f32 1.442695, %v568_v38  ;;  %v542_v45 = vsub.f32 %v535_v43, %v540_v44  ;;  %v566_v60 = vmul.f32 1.442695, %v565_v59 }
 0x280   : > { %886 = vpow2.f32 %v569_v39  ;;  %v543_v46 = vmul.f32 1.442695, %v542_v45 }
 0x281   : > { %888 = vpow2.f32 %v507_v42 }
 0x282   : > { %890 = vpow2.f32 %v543_v46 }
 0x28d   : > { %v887_v40 = vpop.eup %886 }
 0x28e   : > { %v571_v41 = vsel %vm560_vm5, %v887_v40, 0.0  ;;  %v889_v47 = vpop.eup %888 }
 0x28f   : > { %572 = vadd.xlane.f32.xlu1 %v571_v41  ;;  %v509_v49 = vmul.f32 %v889_v47, %v505_v48  ;;  %v891_v52 = vpop.eup %890 }
 0x2e4   : > { %v520_v50 = vpop.xlane.xlu0 %519 }
 0x2e5   : > { %v521_v51 = vadd.f32 %v520_v50, %v509_v49 }
 0x2e7   : > { %523 = vst.msk [vmem:[#allocation3] sm:$0xff] %vm441_vm0, %v521_v51 }
 0x2ee   : > { %v541_v53 = vld [vmem:[#allocation3] sm:$0xff] }
 0x2ef   : > { %v545_v54 = vsub.f32 %v541_v53, %v891_v52 }
 0x2f1   : > { %892 = vlog2.f32 %v545_v54 }
 0x2f2   : > { %894 = vpow2.f32 %v566_v60 }
 0x2fe   : > { %v893_v55 = vpop.eup %892 }
 0x2ff   : > { %v547_v56 = vmul.f32 0.6931472, %v893_v55  ;;  %v895_v61 = vpop.eup %894 }
 0x301   : > { %v548_v57 = vadd.f32 %v547_v56, %v540_v44 }
 0x303   : > { %v549_v58 = vsub.f32 %v548_v57, %v539_v30 }
 0x305   : > { %550 = vst.msk [vmem:[%s431_s6] sm:$0xff] %vm441_vm0, %v549_v58 }
 0x318   : > { %v573_v62 = vpop.xlane.xlu1 %572 }
 0x319   : > { %v574_v63 = vadd.f32 %v895_v61, %v573_v62 }
 0x31b   : > { %896 = vlog2.f32 %v574_v63 }
 0x328   : > { %v897_v0 = vpop.eup %896 }
 0x329   : > { %v576_v1 = vmul.f32 0.6931472, %v897_v0 }
 0x32b   : > { %v577_v2 = vadd.f32 %v576_v1, %v564_v37 }
 0x32d   : > { %v578_v3 = vsub.f32 %v577_v2, %v539_v30 }
 0x32f   : > { %579 = vst.msk [vmem:[%s435_s5] sm:$0xff] %vm441_vm0, %v578_v3 }
 0x330 PF: > { %s23_s29 = sadd.s32 1, %s1062_s29   ;;  %s1391_s21 = smov %s1034_s22 }
 0x331   : > { %p20_p7 = scmp.ge.s32.totalorder %s23_s29, 4   ;;  %s1392_s22 = smov %s1038_s23 }
 0x332   : > { %s1393_s23 = smov %s1241_s27  ;;  %s1394_s24 = smov %s1046_s25 }
 0x333   : > { %s1395_s25 = smov %s1050_s26  ;;  %s1396_s26 = smov %s1198_s12 }
 0x334   : > { %s1397_s27 = smov %s1058_s28  ;;  %s1398_s28 = smov %s1178_s18 }
 0x335   :  { %22 = sbr.rel (!%p20_p7) target bundleno = 14 (0xe), region = 124 }
 0x33a   :  { %613 = vsyncpa [#allocation5], 1 }
 0x33b   :  { %615 = vsyncpa [#allocation5 + $0x1], 1 }
 0x33c   :  { %616 = vsyncpa [#allocation7], 1 }
 0x33d   :  { %618 = vsyncpa [#allocation7 + $0x1], 1 }

</bundles_post_ra>
